<compile_context>
chip_gen: v5e
topology: v5e:2x2
jax: 0.10.0
libtpu: 0.0.40
codegen_flags: <defaults>
</compile_context>

<pallas_src>
import functools

import jax
import jax.numpy as jnp
from jax.experimental import pallas as pl
from jax.experimental.pallas import tpu as pltpu

F32 = jnp.float32
BF16 = jnp.bfloat16
EPS = 1e-5  # nn.LayerNorm default


# ------------------------- helpers -------------------------

def _row_tile(m, cap=256):
    """Largest row tile <= cap that is a multiple of 8 and divides m (else full m)."""
    if m <= cap or m % 8 != 0:
        return m
    tm = cap - (cap % 8)
    while tm >= 8:
        if m % tm == 0:
            return tm
        tm -= 8
    return m


def _parallel():
    return pltpu.CompilerParams(dimension_semantics=("parallel",))


def _ln(x, g, b):
    mu = jnp.mean(x, axis=-1, keepdims=True)
    var = jnp.mean(jnp.square(x - mu), axis=-1, keepdims=True)
    return (x - mu) * jax.lax.rsqrt(var + EPS) * g + b


# ------------------------- Pallas kernels -------------------------

def _matmul_kernel(x_ref, w_ref, o_ref):
    o_ref[...] = jnp.dot(x_ref[...].astype(BF16), w_ref[...],
                         preferred_element_type=F32)


def _layernorm_kernel(x_ref, g_ref, b_ref, o_ref):
    o_ref[...] = _ln(x_ref[...], g_ref[...], b_ref[...])


def _ln_matmul_kernel(x_ref, g_ref, b_ref, w_ref, o_ref):
    xn = _ln(x_ref[...], g_ref[...], b_ref[...])
    o_ref[...] = jnp.dot(xn.astype(BF16), w_ref[...],
                         preferred_element_type=F32)


def _ln_matmul_bias_kernel(x_ref, g_ref, b_ref, w_ref, bias_ref, o_ref):
    xn = _ln(x_ref[...], g_ref[...], b_ref[...])
    o_ref[...] = jnp.dot(xn.astype(BF16), w_ref[...],
                         preferred_element_type=F32) + bias_ref[...]


def _outproj_res_kernel(x_ref, w_ref, b_ref, r_ref, zres_ref):
    z = jnp.dot(x_ref[...].astype(BF16), w_ref[...],
                preferred_element_type=F32) + b_ref[...]
    zres_ref[...] = r_ref[...] + z


def _outproj_res_inner_kernel(x_ref, w_ref, b_ref, r_ref, zres_ref, z_ref):
    z = jnp.dot(x_ref[...].astype(BF16), w_ref[...],
                preferred_element_type=F32) + b_ref[...]
    z_ref[...] = z
    zres_ref[...] = r_ref[...] + z


def _mlp_block_kernel(x_ref, g_ref, b_ref, fcw_ref, fcb_ref, cpw_ref, cpb_ref,
                      o_ref):
    x = x_ref[...]
    xn = _ln(x, g_ref[...], b_ref[...])
    h = jnp.dot(xn.astype(BF16), fcw_ref[...],
                preferred_element_type=F32) + fcb_ref[...]
    h = h * jax.nn.sigmoid(1.702 * h)                 # QuickGELU, f32 math
    y = jnp.dot(h.astype(BF16), cpw_ref[...],
                preferred_element_type=F32) + cpb_ref[...]
    o_ref[...] = x + y                                # fused residual


def _attn_kernel(qkv_ref, o_ref, *, heads, head_dim):
    d = heads * head_dim
    qkv16 = qkv_ref[0].astype(BF16)                   # [S, 3D]
    outs = []
    for hh in range(heads):
        lo = hh * head_dim
        q = qkv16[:, lo:lo + head_dim]                # 1/sqrt(Dh) already folded in
        k = qkv16[:, d + lo:d + lo + head_dim]
        v = qkv16[:, 2 * d + lo:2 * d + lo + head_dim]
        s = jax.lax.dot_general(q, k, (((1,), (1,)), ((), ())),
                                preferred_element_type=F32)   # [S,S], no k.T
        s = s - jnp.max(s, axis=-1, keepdims=True)
        p = jnp.exp(s)
        p = p * pl.reciprocal(jnp.sum(p, axis=-1, keepdims=True), approx=True)
        outs.append(jnp.dot(p.astype(BF16), v, preferred_element_type=F32))
    o_ref[0] = jnp.concatenate(outs, axis=-1)         # lane-dense [S, D]


# ------------------------- Pallas wrappers -------------------------

def matmul_pallas(x, w):
    m, k = x.shape
    n = w.shape[1]
    tm = _row_tile(m)
    cost = pl.CostEstimate(flops=2 * m * k * n, transcendentals=0,
                           bytes_accessed=int(4 * m * k + 2 * k * n + 4 * m * n))
    return pl.pallas_call(
        _matmul_kernel,
        out_shape=jax.ShapeDtypeStruct((m, n), F32),
        grid=(m // tm,),
        in_specs=[pl.BlockSpec((tm, k), lambda i: (i, 0)),
                  pl.BlockSpec((k, n), lambda i: (0, 0))],
        out_specs=pl.BlockSpec((tm, n), lambda i: (i, 0)),
        compiler_params=_parallel(),
        cost_estimate=cost,
    )(x, w)


def layernorm_pallas(x, g, b):
    m, d = x.shape
    tm = _row_tile(m)
    return pl.pallas_call(
        _layernorm_kernel,
        out_shape=jax.ShapeDtypeStruct((m, d), F32),
        grid=(m // tm,),
        in_specs=[pl.BlockSpec((tm, d), lambda i: (i, 0)),
                  pl.BlockSpec((1, d), lambda i: (0, 0)),
                  pl.BlockSpec((1, d), lambda i: (0, 0))],
        out_specs=pl.BlockSpec((tm, d), lambda i: (i, 0)),
        compiler_params=_parallel(),
    )(x, g, b)


def ln_matmul_pallas(x, g, b, w, bias=None):
    m, d = x.shape
    n = w.shape[1]
    tm = _row_tile(m)
    x_spec = pl.BlockSpec((tm, d), lambda i: (i, 0))
    vec_d = pl.BlockSpec((1, d), lambda i: (0, 0))
    w_spec = pl.BlockSpec((d, n), lambda i: (0, 0))
    vec_n = pl.BlockSpec((1, n), lambda i: (0, 0))
    o_spec = pl.BlockSpec((tm, n), lambda i: (i, 0))
    cost = pl.CostEstimate(flops=2 * m * d * n + 8 * m * d, transcendentals=0,
                           bytes_accessed=int(4 * m * d + 2 * d * n + 4 * m * n))
    if bias is None:
        return pl.pallas_call(
            _ln_matmul_kernel,
            out_shape=jax.ShapeDtypeStruct((m, n), F32),
            grid=(m // tm,),
            in_specs=[x_spec, vec_d, vec_d, w_spec],
            out_specs=o_spec,
            compiler_params=_parallel(),
            cost_estimate=cost,
        )(x, g, b, w)
    return pl.pallas_call(
        _ln_matmul_bias_kernel,
        out_shape=jax.ShapeDtypeStruct((m, n), F32),
        grid=(m // tm,),
        in_specs=[x_spec, vec_d, vec_d, w_spec, vec_n],
        out_specs=o_spec,
        compiler_params=_parallel(),
        cost_estimate=cost,
    )(x, g, b, w, bias)


def outproj_residual_pallas(x, w, b, resid, want_inner):
    m, d = x.shape
    n = w.shape[1]
    tm = _row_tile(m)
    x_spec = pl.BlockSpec((tm, d), lambda i: (i, 0))
    w_spec = pl.BlockSpec((d, n), lambda i: (0, 0))
    b_spec = pl.BlockSpec((1, n), lambda i: (0, 0))
    r_spec = pl.BlockSpec((tm, n), lambda i: (i, 0))
    o_spec = pl.BlockSpec((tm, n), lambda i: (i, 0))
    cost = pl.CostEstimate(flops=2 * m * d * n, transcendentals=0,
                           bytes_accessed=int(4 * m * d + 2 * d * n + 8 * m * n))
    if want_inner:
        zres, z = pl.pallas_call(
            _outproj_res_inner_kernel,
            out_shape=(jax.ShapeDtypeStruct((m, n), F32),
                       jax.ShapeDtypeStruct((m, n), F32)),
            grid=(m // tm,),
            in_specs=[x_spec, w_spec, b_spec, r_spec],
            out_specs=(o_spec, o_spec),
            compiler_params=_parallel(),
            cost_estimate=cost,
        )(x, w, b, resid)
        return zres, z
    zres = pl.pallas_call(
        _outproj_res_kernel,
        out_shape=jax.ShapeDtypeStruct((m, n), F32),
        grid=(m // tm,),
        in_specs=[x_spec, w_spec, b_spec, r_spec],
        out_specs=o_spec,
        compiler_params=_parallel(),
        cost_estimate=cost,
    )(x, w, b, resid)
    return zres, None


def mlp_block_pallas(x, g, b, fcw, fcb, cpw, cpb):
    m, d = x.shape
    hdim = fcw.shape[1]
    tm = _row_tile(m)
    cost = pl.CostEstimate(flops=4 * m * d * hdim, transcendentals=m * hdim,
                           bytes_accessed=int(8 * m * d + 4 * d * hdim))
    return pl.pallas_call(
        _mlp_block_kernel,
        out_shape=jax.ShapeDtypeStruct((m, d), F32),
        grid=(m // tm,),
        in_specs=[pl.BlockSpec((tm, d), lambda i: (i, 0)),
                  pl.BlockSpec((1, d), lambda i: (0, 0)),
                  pl.BlockSpec((1, d), lambda i: (0, 0)),
                  pl.BlockSpec((d, hdim), lambda i: (0, 0)),
                  pl.BlockSpec((1, hdim), lambda i: (0, 0)),
                  pl.BlockSpec((hdim, d), lambda i: (0, 0)),
                  pl.BlockSpec((1, d), lambda i: (0, 0))],
        out_specs=pl.BlockSpec((tm, d), lambda i: (i, 0)),
        compiler_params=_parallel(),
        cost_estimate=cost,
    )(x, g, b, fcw, fcb, cpw, cpb)


def attention_pallas(qkv, heads, head_dim):
    bsz, s, three_d = qkv.shape
    d = heads * head_dim
    cost = pl.CostEstimate(flops=4 * bsz * heads * s * s * head_dim,
                           transcendentals=bsz * heads * s * s,
                           bytes_accessed=int(4 * bsz * s * (three_d + d)))
    return pl.pallas_call(
        functools.partial(_attn_kernel, heads=heads, head_dim=head_dim),
        out_shape=jax.ShapeDtypeStruct((bsz, s, d), F32),
        grid=(bsz,),
        in_specs=[pl.BlockSpec((1, s, three_d), lambda i: (i, 0, 0))],
        out_specs=pl.BlockSpec((1, s, d), lambda i: (i, 0, 0)),
        compiler_params=_parallel(),
        cost_estimate=cost,
    )(qkv)


PALLAS_OPS = (matmul_pallas, layernorm_pallas, ln_matmul_pallas,
              outproj_residual_pallas, mlp_block_pallas, attention_pallas)


# ------------------------- pure-JAX reference ops (same numerics) -------------------------

def _jnp_matmul(x, w):
    return jnp.dot(x.astype(BF16), w, preferred_element_type=F32)


def _jnp_layernorm(x, g, b):
    return _ln(x, g, b)


def _jnp_ln_matmul(x, g, b, w, bias=None):
    y = jnp.dot(_ln(x, g, b).astype(BF16), w, preferred_element_type=F32)
    return y if bias is None else y + bias


def _jnp_outproj_residual(x, w, b, resid, want_inner):
    z = jnp.dot(x.astype(BF16), w, preferred_element_type=F32) + b
    return resid + z, (z if want_inner else None)


def _jnp_mlp_block(x, g, b, fcw, fcb, cpw, cpb):
    h = jnp.dot(_ln(x, g, b).astype(BF16), fcw, preferred_element_type=F32) + fcb
    h = h * jax.nn.sigmoid(1.702 * h)
    y = jnp.dot(h.astype(BF16), cpw, preferred_element_type=F32) + cpb
    return x + y


def _jnp_attention(qkv, heads, head_dim):
    bsz, s, _ = qkv.shape
    d = heads * head_dim
    qkv16 = qkv.astype(BF16)
    q = qkv16[..., :d].reshape(bsz, s, heads, head_dim).transpose(0, 2, 1, 3)
    k = qkv16[..., d:2 * d].reshape(bsz, s, heads, head_dim).transpose(0, 2, 1, 3)
    v = qkv16[..., 2 * d:].reshape(bsz, s, heads, head_dim).transpose(0, 2, 1, 3)
    sc = jnp.einsum('bhqd,bhkd->bhqk', q, k, preferred_element_type=F32)
    p = jax.nn.softmax(sc, axis=-1)
    o = jnp.einsum('bhqk,bhkd->bhqd', p.astype(BF16), v,
                   preferred_element_type=F32)
    return o.transpose(0, 2, 1, 3).reshape(bsz, s, d)


JNP_OPS = (_jnp_matmul, _jnp_layernorm, _jnp_ln_matmul,
           _jnp_outproj_residual, _jnp_mlp_block, _jnp_attention)


# ------------------------- VITWrapper.forward -------------------------

def vit_wrapper_forward(x, params, cfg, loss_layer_num, ops):
    matmul, layernorm, ln_matmul, outproj_residual, mlp_block, attention = ops
    bsz, chan, hi, wi = x.shape
    patch, d, heads = cfg['patch'], cfg['width'], cfg['heads']
    head_dim = d // heads
    gh, gw = hi // patch, wi // patch
    n_patch = gh * gw
    s = n_patch + 1
    m = bsz * s

    # conv1 (stride == kernel == patch, bias=False) -> patch flatten + matmul
    patches = x.reshape(bsz, chan, gh, patch, gw, patch)
    patches = patches.transpose(0, 2, 4, 1, 3, 5).reshape(bsz * n_patch,
                                                          chan * patch * patch)
    tok = matmul(patches, params['conv_w']).reshape(bsz, n_patch, d)

    # class embedding + positional embedding
    cls = jnp.broadcast_to(params['cls'].reshape(1, 1, d), (bsz, 1, d))
    h = jnp.concatenate([cls, tok], axis=1) + params['pos'][None]        # [B,S,D]

    # batch-first throughout (identical math to the seq-first
    # nn.MultiheadAttention path: no mask, per-(batch, head) softmax)
    h = layernorm(h.reshape(m, d), params['ln_pre_g'], params['ln_pre_b'])

    inner = {}
    for i, blk in enumerate(params['blocks']):
        # fused ln_1 + qkv projection (scale folded into the Q slice of in_w)
        qkv = ln_matmul(h, blk['ln1_g'], blk['ln1_b'], blk['in_w'], blk['in_b'])
        att = attention(qkv.reshape(bsz, s, 3 * d), heads, head_dim)     # [B,S,D]
        want = i in loss_layer_num
        # fused out-proj + residual (optionally also emits z for inner features)
        h, z = outproj_residual(att.reshape(m, d), blk['out_w'], blk['out_b'],
                                h, want)
        if want:
            inner[f'inner_{i}_att'] = z.reshape(bsz, s, d)
        # fused ln_2 + fc + QuickGELU + c_proj + residual
        h = mlp_block(h, blk['ln2_g'], blk['ln2_b'],
                      blk['fc_w'], blk['fc_b'], blk['cproj_w'], blk['cproj_b'])

    cls_tok = h.reshape(bsz, s, d)[:, 0, :]                              # [B, D]
    x_cls = ln_matmul(cls_tok, params['ln_post_g'], params['ln_post_b'],
                      params['proj'], None)                              # proj has no bias
    return x_cls, inner


# ------------------------- deterministic parameter init & prep -------------------------

def init_params(key, cfg):
    d, s, patch, chan = cfg['width'], cfg['seq'], cfg['patch'], cfg['in_ch']
    h4, out_dim, layers = 4 * cfg['width'], cfg['out_dim'], cfg['layers']
    ks = iter(jax.random.split(key, 8 + 8 * layers))

    def nrm(shape, sc=0.02):
        return jax.random.normal(next(ks), shape, F32) * sc

    params = {
        'conv_w': nrm((chan * patch * patch, d)),     # conv1 has bias=False
        'cls': nrm((d,)),
        'pos': nrm((s, d)),
        'ln_pre_g': jnp.ones((d,), F32), 'ln_pre_b': jnp.zeros((d,), F32),
        'ln_post_g': jnp.ones((d,), F32), 'ln_post_b': jnp.zeros((d,), F32),
        'proj': nrm((d, out_dim)),
        'blocks': [],
    }
    for _ in range(layers):
        params['blocks'].append({
            'ln1_g': jnp.ones((d,), F32), 'ln1_b': jnp.zeros((d,), F32),
            'in_w': nrm((d, 3 * d)), 'in_b': nrm((3 * d,)),
            'out_w': nrm((d, d)), 'out_b': nrm((d,)),
            'ln2_g': jnp.ones((d,), F32), 'ln2_b': jnp.zeros((d,), F32),
            'fc_w': nrm((d, h4)), 'fc_b': nrm((h4,)),
            'cproj_w': nrm((h4, d)), 'cproj_b': nrm((d,)),
        })
    return params


def prep_params(raw, cfg):
    """One-time transform: bf16 matmul weights, (1, N) f32 biases/gains,
    1/sqrt(Dh) folded into the Q slice of the qkv projection."""
    d, heads = cfg['width'], cfg['heads']
    scale = 1.0 / ((d // heads) ** 0.5)

    def bf(w):
        return w.astype(BF16)

    def row(v):
        return v.reshape(1, -1).astype(F32)

    p = {
        'conv_w': bf(raw['conv_w']),
        'cls': raw['cls'], 'pos': raw['pos'],
        'ln_pre_g': row(raw['ln_pre_g']), 'ln_pre_b': row(raw['ln_pre_b']),
        'ln_post_g': row(raw['ln_post_g']), 'ln_post_b': row(raw['ln_post_b']),
        'proj': bf(raw['proj']),
        'blocks': [],
    }
    for blk in raw['blocks']:
        in_w = blk['in_w'].at[:, :d].multiply(scale)
        in_b = blk['in_b'].at[:d].multiply(scale)
        p['blocks'].append({
            'ln1_g': row(blk['ln1_g']), 'ln1_b': row(blk['ln1_b']),
            'in_w': bf(in_w), 'in_b': row(in_b),
            'out_w': bf(blk['out_w']), 'out_b': row(blk['out_b']),
            'ln2_g': row(blk['ln2_g']), 'ln2_b': row(blk['ln2_b']),
            'fc_w': bf(blk['fc_w']), 'fc_b': row(blk['fc_b']),
            'cproj_w': bf(blk['cproj_w']), 'cproj_b': row(blk['cproj_b']),
        })
    return p


# ------------------------- main -------------------------

if __name__ == "__main__":
    cfg = dict(in_ch=3, img=16, patch=8, width=32, heads=4, layers=2, out_dim=16)
    cfg['seq'] = (cfg['img'] // cfg['patch']) ** 2 + 1     # 4 patches + CLS = 5

    key = jax.random.PRNGKey(0)
    pkey, xkey = jax.random.split(key)
    params = prep_params(init_params(pkey, cfg), cfg)
    x = jax.random.normal(xkey, (2, cfg['in_ch'], cfg['img'], cfg['img']), F32)
    loss_layer_num = [0]

    out_cls, inner = vit_wrapper_forward(x, params, cfg, loss_layer_num, PALLAS_OPS)
    jax.block_until_ready(out_cls)

    ref_cls, ref_inner = vit_wrapper_forward(x, params, cfg, loss_layer_num, JNP_OPS)
    assert out_cls.shape == (2, cfg['out_dim'])
    assert set(inner.keys()) == {'inner_0_att'}
    assert inner['inner_0_att'].shape == (2, cfg['seq'], cfg['width'])
    assert jnp.allclose(out_cls, ref_cls, atol=1e-2, rtol=1e-2), \
        float(jnp.max(jnp.abs(out_cls - ref_cls)))
    for name in ref_inner:
        assert jnp.allclose(inner[name], ref_inner[name], atol=1e-2, rtol=1e-2)

    print("KERNEL_OK")
</pallas_src>

<mosaic_0001>
module attributes {stable_mosaic.version = 11 : i64} {
  func.func @_matmul_kernel(%arg0: i32, %arg1: memref<8x192xf32, #tpu.memory_space<vmem>>, %arg2: memref<192x32xbf16, #tpu.memory_space<vmem>>, %arg3: memref<8x32xf32, #tpu.memory_space<vmem>>) attributes {dimension_semantics = [#tpu.dimension_semantics<parallel>], iteration_bounds = array<i64: 1>, scalar_prefetch = 0 : i64, scratch_operands = 0 : i64, tpu.core_type = #tpu.core_type<tc>, window_params = [{transform_indices = @transform_0, window_bounds = array<i64: 8, 192>}, {pipeline_mode = #tpu.pipeline_mode<synchronous>, transform_indices = @transform_1, window_bounds = array<i64: 192, 32>}, {transform_indices = @transform_2, window_bounds = array<i64: 8, 32>}]} {
    %c0 = arith.constant 0 : index
    %c0_0 = arith.constant 0 : index
    %0 = vector.load %arg1[%c0, %c0_0] : memref<8x192xf32, #tpu.memory_space<vmem>>, vector<8x192xf32>
    %1 = arith.truncf %0 : vector<8x192xf32> to vector<8x192xbf16>
    %c0_1 = arith.constant 0 : index
    %c0_2 = arith.constant 0 : index
    %2 = vector.load %arg2[%c0_1, %c0_2] : memref<192x32xbf16, #tpu.memory_space<vmem>>, vector<192x32xbf16>
    %cst = arith.constant dense<0.000000e+00> : vector<8x32xf32>
    %3 = tpu.matmul %1, %2, %cst {dimension_numbers = #tpu.dot_dimension_numbers<[1], [0], [0], [1], [0, 0, 1, 1], [], []>} : vector<8x192xbf16>, vector<192x32xbf16>, vector<8x32xf32> -> vector<8x32xf32>
    %c0_3 = arith.constant 0 : index
    %c0_4 = arith.constant 0 : index
    %4 = vector.load %arg3[%c0_3, %c0_4] : memref<8x32xf32, #tpu.memory_space<vmem>>, vector<8x32xf32>
    tpu.vector_store %arg3[%c0_3, %c0_4], %3 {strides = array<i32>} : memref<8x32xf32, #tpu.memory_space<vmem>>, vector<8x32xf32>,
    return
  }
  func.func @transform_0(%arg0: i32) -> (i32, i32) {
    %c0_i32 = arith.constant 0 : i32
    %c0_i32_0 = arith.constant 0 : i32
    return %arg0, %c0_i32 : i32, i32
  }
  func.func @transform_1(%arg0: i32) -> (i32, i32) {
    %c0_i32 = arith.constant 0 : i32
    %c0_i32_0 = arith.constant 0 : i32
    %c0_i32_1 = arith.constant 0 : i32
    return %c0_i32, %c0_i32_0 : i32, i32
  }
  func.func @transform_2(%arg0: i32) -> (i32, i32) {
    %c0_i32 = arith.constant 0 : i32
    %c0_i32_0 = arith.constant 0 : i32
    return %arg0, %c0_i32 : i32, i32
  }
}

</mosaic_0001>

<bundles_post_ra>
// kernel: tpu_custom_call.1
= control target key start
LH: loop header
LB: loop body
LE: loop exit
PB: predicated region body
PF: predicated region fallthrough
CT: control target
= control target key end

     0   :  { %s310_s0 = inlined_call_operand.vmem [shape: f32[8,192], index: 0, kind: input, shape index: {}]   ;;  %s311_s1 = inlined_call_operand.vmem [shape: bf16[192,32], index: 1, kind: input, shape index: {}]   ;;  %s312_s2 = inlined_call_operand.hbm [shape: f32[8,32], index: 2, kind: output, shape index: {}]  }
   0x1   :  { %v217_v0 = vld [vmem:[%s311_s1 + $0x38] sm:$0xff]  ;;  %v216_v2 = vld [vmem:[%s311_s1 + $0x30] sm:$0xff] }
   0x2   :  { %v221_v1 = vld [vmem:[%s311_s1 + $0x58] sm:$0xff]  ;;  %117 = vmatpush.bf16.msra.mxu0 %v217_v0  ;;  %v220_v3 = vld [vmem:[%s311_s1 + $0x50] sm:$0xff] }
   0x3   :  { %134 = vmatpush.bf16.msra.mxu1 %v221_v1 }
   0x4   :  { %7 = vsyncpa [#allocation3], 0  ;;  %v215_v4 = vld [vmem:[%s311_s1 + $0x28] sm:$0xff]  ;;  %v214_v6 = vld [vmem:[%s311_s1 + $0x20] sm:$0xff]  ;;  %vm113_vm0 = vcmask 523264   ;;  %s249_s9 = smov [#allocation2]  }
   0x5   :  { %v219_v5 = vld [vmem:[%s311_s1 + $0x48] sm:$0xff]  ;;  %v218_v7 = vld [vmem:[%s311_s1 + $0x40] sm:$0xff]  ;;  %v213_v9 = vld [vmem:[%s311_s1 + $0x18] sm:$0xff]  ;;  %s150_s10 = sshll.u32 %s249_s9, 4  ;;  %s152_s13 = sshll.u32 %s312_s2, 4  ;;  %vm143_vm1 = vcmask 261120   ;;  %s151_s10 = int_to_ptr.vmem [resolvable:$true] %s150_s10  ;;  %s153_s13 = int_to_ptr.hbm [resolvable:$true] %s152_s13 }
   0x6   :  { %118 = vmatpush.bf16.msra.mxu0 %v216_v2  ;;  %v14_v8 = vld [vmem:[%s310_s0 + $0x8] sm:$0xff]  ;;  %v212_v11 = vld [vmem:[%s311_s1 + $0x10] sm:$0xff]  ;;  %v210_v13 = vld [vmem:[%s311_s1] sm:$0xff] }
   0x7   :  { %135 = vmatpush.bf16.msra.mxu1 %v220_v3  ;;  %v16_v10 = vpack.c.bf16 %v14_v8, %v14_v8  ;;  %v211_v12 = vld [vmem:[%s311_s1 + $0x8] sm:$0xff]  ;;  %v13_v14 = vld [vmem:[%s310_s0] sm:$0xff] }
   0x8   :  { %v15_v15 = vpack.c.bf16 %v13_v14, %v13_v14 }
   0xa   :  { %119 = vmatpush.bf16.msra.mxu0 %v215_v4 }
   0xb   :  { %136 = vmatpush.bf16.msra.mxu1 %v219_v5 }
   0xe   :  { %120 = vmatpush.bf16.msra.mxu0 %v214_v6 }
   0xf   :  { %137 = vmatpush.bf16.msra.mxu1 %v218_v7 }
  0x12   :  { %121 = vmatpush.bf16.msra.mxu0 %v213_v9  ;;  %209 = vmatmul.msk.bf16.vlgmr.msra.gmra.mxu1 %vm113_vm0, %v16_v10 }
  0x16   :  { %122 = vmatpush.bf16.msra.mxu0 %v212_v11 }
  0x1a   :  { %123 = vmatpush.bf16.msra.mxu0 %v211_v12 }
  0x1e   :  { %124 = vmatpush.bf16.msra.mxu0 %v210_v13 }
  0x21   :  { %125 = vmatmul.bf16.vlgmr.msra.gmra.mxu0 %v15_v15 }
  0x8f   :  { %v139_v16 = vpop.f32.mrf.mxu1 }
  0x97   :  { %v141_v17 = vpop.f32.mrf.mxu1 }
  0x9e   :  { %v126_v18 = vpop.f32.mrf.mxu0 }
  0x9f   :  { %v140_v19 = vadd.f32 %v139_v16, %v126_v18 }
  0xa1   :  { %144 = vst.msk [vmem:[#allocation2] sm:$0xff] %vm143_vm1, %v140_v19 }
  0xa2   :  { %155 = dma.vmem_to_hbm [thread:$0]  %s151_s10, 128, %s153_s13, [#allocation3]  }
  0xa6   :  { %v128_v20 = vpop.f32.mrf.mxu0 }
  0xa7   :  { %247 = dma.done.wait [#allocation3], 128  }
  0xa8   :  { %248 = vsyncadd [#allocation3], 4294967168 }
  0xa9   :  { %160 = vsyncpa [#allocation3], 1 }

</bundles_post_ra>
